<compile_context>
chip_gen: v5e
topology: v5e:2x2
jax: 0.10.0
libtpu: 0.0.40
codegen_flags: <defaults>
</compile_context>

<pallas_src>
import functools

import jax
import jax.numpy as jnp
from jax.experimental import pallas as pl
from jax.experimental.pallas import tpu as pltpu


# ----------------------------------------------------------------------------
# Fused kernel: one elementwise pass over the four inputs.
#   coef_ref : (TR, 8)  per-row (= per-channel, tiled over batch) BN coeffs
#   w*_ref   : (TR, L)  input slabs, lane axis = H*W (multiple of 128)
# ----------------------------------------------------------------------------
def _grcl_unit_kernel(coef_ref, wgf_ref, wgr_ref, wf_ref, wr_ref, o_ref):
    coef = coef_ref[...]                       # (TR, 8) f32
    s_gfu = coef[:, 0:1]                       # scale(BN_gfu)
    s_grx = coef[:, 1:2]                       # scale(BN_grx)
    c_g   = coef[:, 2:3]                       # bias(BN_gfu) + bias(BN_grx)
    s_fu  = coef[:, 3:4]                       # scale(BN_fu)
    c_fu  = coef[:, 4:5]                       # bias(BN_fu)
    s_rxg = coef[:, 5:6]                       # scale(BN_rx) * scale(BN_Gx)
    c_rxg = coef[:, 6:7]                       # bias(BN_rx)  * scale(BN_Gx)
    b_gx  = coef[:, 7:8]                       # bias(BN_Gx)

    # gate G = sigmoid(BN_gfu(wgf_u) + BN_grx(wgr_x))
    g_pre = wgf_ref[...] * s_gfu + wgr_ref[...] * s_grx + c_g
    gate = 1.0 / (1.0 + jnp.exp(-g_pre))       # sigmoid via EUP exp

    # BN_Gx(BN_rx(wr_x) * G)  (BN scales commute through the product)
    second = (wr_ref[...] * s_rxg + c_rxg) * gate + b_gx
    # BN_fu(wf_u)
    first = wf_ref[...] * s_fu + c_fu

    o_ref[...] = jnp.maximum(first + second, 0.0)


# ----------------------------------------------------------------------------
# Wrapper: fold BNs, reshape to lane-dense slabs, tile rows, call the kernel.
# ----------------------------------------------------------------------------
def _fold_bn(bn, eps):
    scale = bn["gamma"] * jax.lax.rsqrt(bn["var"] + eps)
    bias = bn["beta"] - bn["mean"] * scale
    return scale, bias


def grcl_unit_forward(wgf_u, wgr_x, wf_u, wr_x, params, eps=1e-5):
    N, C, H, W = wgf_u.shape
    rows, lanes = N * C, H * W

    # Fold the five inference-mode BatchNorms into 8 per-channel coefficients.
    s_gfu, b_gfu = _fold_bn(params["BN_gfu"], eps)
    s_grx, b_grx = _fold_bn(params["BN_grx"], eps)
    s_fu, b_fu = _fold_bn(params["BN_fu"], eps)
    s_rx, b_rx = _fold_bn(params["BN_rx"], eps)
    s_gx, b_gx = _fold_bn(params["BN_Gx"], eps)
    coef_c = jnp.stack(
        [s_gfu, s_grx, b_gfu + b_grx, s_fu, b_fu,
         s_rx * s_gx, b_rx * s_gx, b_gx], axis=1).astype(jnp.float32)  # (C, 8)
    coef = jnp.tile(coef_c, (N, 1))                                    # (N*C, 8)

    # Lane-dense 2-D slabs: (N*C, H*W); reshape from NCHW is free.
    slabs = [t.reshape(rows, lanes).astype(jnp.float32)
             for t in (wgf_u, wgr_x, wf_u, wr_x)]

    # Pad lanes to a multiple of 128 (unmasked full-width vector ops) and rows
    # to a multiple of 16 so we always get >=2 'parallel' grid blocks (v7x).
    lanes_pad = ((lanes + 127) // 128) * 128
    rows_pad = max(16, ((rows + 15) // 16) * 16)
    if lanes_pad != lanes or rows_pad != rows:
        slabs = [jnp.pad(s, ((0, rows_pad - rows), (0, lanes_pad - lanes)))
                 for s in slabs]
        coef = jnp.pad(coef, ((0, rows_pad - rows), (0, 0)))

    # Row tile: half the rows (2 parallel blocks); halve further if huge.
    tr = rows_pad // 2
    while tr > 1024 and tr % 16 == 0 and rows_pad % (tr // 2) == 0:
        tr //= 2
    grid = (rows_pad // tr,)

    out = pl.pallas_call(
        _grcl_unit_kernel,
        out_shape=jax.ShapeDtypeStruct((rows_pad, lanes_pad), jnp.float32),
        grid=grid,
        in_specs=[
            pl.BlockSpec((tr, 8), lambda i: (i, 0)),            # folded BN coefs
            pl.BlockSpec((tr, lanes_pad), lambda i: (i, 0)),    # wgf_u
            pl.BlockSpec((tr, lanes_pad), lambda i: (i, 0)),    # wgr_x
            pl.BlockSpec((tr, lanes_pad), lambda i: (i, 0)),    # wf_u
            pl.BlockSpec((tr, lanes_pad), lambda i: (i, 0)),    # wr_x
        ],
        out_specs=pl.BlockSpec((tr, lanes_pad), lambda i: (i, 0)),
        compiler_params=pltpu.CompilerParams(
            dimension_semantics=("parallel",)),
    )(coef, *slabs)

    return out[:rows, :lanes].reshape(N, C, H, W)


# ----------------------------------------------------------------------------
# Pure-JAX reference (same semantics, un-fused) for correctness checking.
# ----------------------------------------------------------------------------
def _bn_ref(x, bn, eps=1e-5):
    g = bn["gamma"].reshape(1, -1, 1, 1)
    b = bn["beta"].reshape(1, -1, 1, 1)
    m = bn["mean"].reshape(1, -1, 1, 1)
    v = bn["var"].reshape(1, -1, 1, 1)
    return (x - m) / jnp.sqrt(v + eps) * g + b


def grcl_unit_ref(wgf_u, wgr_x, wf_u, wr_x, params, eps=1e-5):
    G = jax.nn.sigmoid(_bn_ref(wgf_u, params["BN_gfu"], eps)
                       + _bn_ref(wgr_x, params["BN_grx"], eps))
    x_first = _bn_ref(wf_u, params["BN_fu"], eps)
    x_second = _bn_ref(_bn_ref(wr_x, params["BN_rx"], eps) * G,
                       params["BN_Gx"], eps)
    return jax.nn.relu(x_first + x_second)


if __name__ == "__main__":
    key = jax.random.PRNGKey(0)
    N, C, H, W = 2, 32, 16, 16
    ks = jax.random.split(key, 9)

    wgf_u = jax.random.normal(ks[0], (N, C, H, W), jnp.float32)
    wgr_x = jax.random.normal(ks[1], (N, C, H, W), jnp.float32)
    wf_u = jax.random.normal(ks[2], (N, C, H, W), jnp.float32)
    wr_x = jax.random.normal(ks[3], (N, C, H, W), jnp.float32)

    def bn_params(k):
        k1, k2, k3, k4 = jax.random.split(k, 4)
        return {
            "gamma": 1.0 + 0.1 * jax.random.normal(k1, (C,), jnp.float32),
            "beta": 0.1 * jax.random.normal(k2, (C,), jnp.float32),
            "mean": 0.1 * jax.random.normal(k3, (C,), jnp.float32),
            "var": jax.random.uniform(k4, (C,), jnp.float32,
                                      minval=0.5, maxval=1.5),
        }

    params = {name: bn_params(k)
              for name, k in zip(
                  ["BN_gfu", "BN_grx", "BN_fu", "BN_rx", "BN_Gx"], ks[4:9])}

    fwd = jax.jit(functools.partial(grcl_unit_forward, params=params))
    out = jax.block_until_ready(fwd(wgf_u, wgr_x, wf_u, wr_x))

    ref = grcl_unit_ref(wgf_u, wgr_x, wf_u, wr_x, params)
    assert out.shape == (N, C, H, W), out.shape
    assert bool(jnp.all(jnp.isfinite(out)))
    max_err = float(jnp.max(jnp.abs(out - ref)))
    assert max_err < 1e-4, max_err
    print("KERNEL_OK")
</pallas_src>

<mosaic_0001>
module attributes {stable_mosaic.version = 11 : i64} {
  func.func @_grcl_unit_kernel(%arg0: i32, %arg1: memref<32x8xf32, #tpu.memory_space<vmem>>, %arg2: memref<32x256xf32, #tpu.memory_space<vmem>>, %arg3: memref<32x256xf32, #tpu.memory_space<vmem>>, %arg4: memref<32x256xf32, #tpu.memory_space<vmem>>, %arg5: memref<32x256xf32, #tpu.memory_space<vmem>>, %arg6: memref<32x256xf32, #tpu.memory_space<vmem>>) attributes {dimension_semantics = [#tpu.dimension_semantics<parallel>], iteration_bounds = array<i64: 2>, scalar_prefetch = 0 : i64, scratch_operands = 0 : i64, tpu.core_type = #tpu.core_type<tc>, window_params = [{transform_indices = @transform_0, window_bounds = array<i64: 32, 8>}, {transform_indices = @transform_1, window_bounds = array<i64: 32, 256>}, {transform_indices = @transform_2, window_bounds = array<i64: 32, 256>}, {transform_indices = @transform_3, window_bounds = array<i64: 32, 256>}, {transform_indices = @transform_4, window_bounds = array<i64: 32, 256>}, {transform_indices = @transform_5, window_bounds = array<i64: 32, 256>}]} {
    %c0 = arith.constant 0 : index
    %c0_0 = arith.constant 0 : index
    %0 = vector.load %arg1[%c0, %c0_0] : memref<32x8xf32, #tpu.memory_space<vmem>>, vector<32x8xf32>
    %1 = vector.extract_strided_slice %0 {offsets = [0, 0], sizes = [32, 1], strides = [1, 1]} : vector<32x8xf32> to vector<32x1xf32>
    %2 = vector.extract_strided_slice %0 {offsets = [0, 1], sizes = [32, 1], strides = [1, 1]} : vector<32x8xf32> to vector<32x1xf32>
    %3 = vector.extract_strided_slice %0 {offsets = [0, 2], sizes = [32, 1], strides = [1, 1]} : vector<32x8xf32> to vector<32x1xf32>
    %4 = vector.extract_strided_slice %0 {offsets = [0, 3], sizes = [32, 1], strides = [1, 1]} : vector<32x8xf32> to vector<32x1xf32>
    %5 = vector.extract_strided_slice %0 {offsets = [0, 4], sizes = [32, 1], strides = [1, 1]} : vector<32x8xf32> to vector<32x1xf32>
    %6 = vector.extract_strided_slice %0 {offsets = [0, 5], sizes = [32, 1], strides = [1, 1]} : vector<32x8xf32> to vector<32x1xf32>
    %7 = vector.extract_strided_slice %0 {offsets = [0, 6], sizes = [32, 1], strides = [1, 1]} : vector<32x8xf32> to vector<32x1xf32>
    %8 = vector.extract_strided_slice %0 {offsets = [0, 7], sizes = [32, 1], strides = [1, 1]} : vector<32x8xf32> to vector<32x1xf32>
    %c0_1 = arith.constant 0 : index
    %c0_2 = arith.constant 0 : index
    %9 = vector.load %arg2[%c0_1, %c0_2] : memref<32x256xf32, #tpu.memory_space<vmem>>, vector<32x256xf32>
    %10 = vector.broadcast %1 : vector<32x1xf32> to vector<32x256xf32>
    %11 = arith.mulf %9, %10 : vector<32x256xf32>
    %c0_3 = arith.constant 0 : index
    %c0_4 = arith.constant 0 : index
    %12 = vector.load %arg3[%c0_3, %c0_4] : memref<32x256xf32, #tpu.memory_space<vmem>>, vector<32x256xf32>
    %13 = vector.broadcast %2 : vector<32x1xf32> to vector<32x256xf32>
    %14 = arith.mulf %12, %13 : vector<32x256xf32>
    %15 = arith.addf %11, %14 : vector<32x256xf32>
    %16 = vector.broadcast %3 : vector<32x1xf32> to vector<32x256xf32>
    %17 = arith.addf %15, %16 : vector<32x256xf32>
    %cst = arith.constant 0.000000e+00 : f32
    %18 = vector.broadcast %cst : f32 to vector<32x256xf32>
    %19 = arith.subf %18, %17 : vector<32x256xf32>
    %20 = math.exp %19 : vector<32x256xf32>
    %cst_5 = arith.constant 1.000000e+00 : f32
    %21 = vector.broadcast %cst_5 : f32 to vector<32x256xf32>
    %22 = arith.addf %21, %20 : vector<32x256xf32>
    %cst_6 = arith.constant 1.000000e+00 : f32
    %23 = vector.broadcast %cst_6 : f32 to vector<32x256xf32>
    %24 = arith.divf %23, %22 : vector<32x256xf32>
    %c0_7 = arith.constant 0 : index
    %c0_8 = arith.constant 0 : index
    %25 = vector.load %arg5[%c0_7, %c0_8] : memref<32x256xf32, #tpu.memory_space<vmem>>, vector<32x256xf32>
    %26 = vector.broadcast %6 : vector<32x1xf32> to vector<32x256xf32>
    %27 = arith.mulf %25, %26 : vector<32x256xf32>
    %28 = vector.broadcast %7 : vector<32x1xf32> to vector<32x256xf32>
    %29 = arith.addf %27, %28 : vector<32x256xf32>
    %30 = arith.mulf %29, %24 : vector<32x256xf32>
    %31 = vector.broadcast %8 : vector<32x1xf32> to vector<32x256xf32>
    %32 = arith.addf %30, %31 : vector<32x256xf32>
    %c0_9 = arith.constant 0 : index
    %c0_10 = arith.constant 0 : index
    %33 = vector.load %arg4[%c0_9, %c0_10] : memref<32x256xf32, #tpu.memory_space<vmem>>, vector<32x256xf32>
    %34 = vector.broadcast %4 : vector<32x1xf32> to vector<32x256xf32>
    %35 = arith.mulf %33, %34 : vector<32x256xf32>
    %36 = vector.broadcast %5 : vector<32x1xf32> to vector<32x256xf32>
    %37 = arith.addf %35, %36 : vector<32x256xf32>
    %38 = arith.addf %37, %32 : vector<32x256xf32>
    %cst_11 = arith.constant 0.000000e+00 : f32
    %39 = vector.broadcast %cst_11 : f32 to vector<32x256xf32>
    %40 = arith.maximumf %38, %39 : vector<32x256xf32>
    %c0_12 = arith.constant 0 : index
    %c0_13 = arith.constant 0 : index
    %41 = vector.load %arg6[%c0_12, %c0_13] : memref<32x256xf32, #tpu.memory_space<vmem>>, vector<32x256xf32>
    tpu.vector_store %arg6[%c0_12, %c0_13], %40 {strides = array<i32>} : memref<32x256xf32, #tpu.memory_space<vmem>>, vector<32x256xf32>,
    return
  }
  func.func @transform_0(%arg0: i32) -> (i32, i32) {
    %c0_i32 = arith.constant 0 : i32
    %c0_i32_0 = arith.constant 0 : i32
    return %arg0, %c0_i32 : i32, i32
  }
  func.func @transform_1(%arg0: i32) -> (i32, i32) {
    %c0_i32 = arith.constant 0 : i32
    %c0_i32_0 = arith.constant 0 : i32
    return %arg0, %c0_i32 : i32, i32
  }
  func.func @transform_2(%arg0: i32) -> (i32, i32) {
    %c0_i32 = arith.constant 0 : i32
    %c0_i32_0 = arith.constant 0 : i32
    return %arg0, %c0_i32 : i32, i32
  }
  func.func @transform_3(%arg0: i32) -> (i32, i32) {
    %c0_i32 = arith.constant 0 : i32
    %c0_i32_0 = arith.constant 0 : i32
    return %arg0, %c0_i32 : i32, i32
  }
  func.func @transform_4(%arg0: i32) -> (i32, i32) {
    %c0_i32 = arith.constant 0 : i32
    %c0_i32_0 = arith.constant 0 : i32
    return %arg0, %c0_i32 : i32, i32
  }
  func.func @transform_5(%arg0: i32) -> (i32, i32) {
    %c0_i32 = arith.constant 0 : i32
    %c0_i32_0 = arith.constant 0 : i32
    return %arg0, %c0_i32 : i32, i32
  }
}

</mosaic_0001>

<bundles_post_ra>
// kernel: grcl_unit_forward.1
= control target key start
LH: loop header
LB: loop body
LE: loop exit
PB: predicated region body
PF: predicated region fallthrough
CT: control target
= control target key end

     0   :  { %s1005_s18 = smov 0   ;;  %s1390_s0 = inlined_call_operand.vmem [shape: f32[64,8], index: 0, kind: input, shape index: {}]   ;;  %s1391_s1 = inlined_call_operand.vmem [shape: f32[64,256], index: 1, kind: input, shape index: {}]   ;;  %s1392_s2 = inlined_call_operand.vmem [shape: f32[64,256], index: 2, kind: input, shape index: {}]   ;;  %s1393_s3 = inlined_call_operand.vmem [shape: f32[64,256], index: 3, kind: input, shape index: {}]   ;;  %s1394_s4 = inlined_call_operand.vmem [shape: f32[64,256], index: 4, kind: input, shape index: {}]   ;;  %s1395_s5 = inlined_call_operand.vmem [shape: f32[64,256], index: 5, kind: output, shape index: {}]  }
   0x1 LB: > { %s860_s19 = sadd.s32 4294967295, %s965_s18   ;;  %p864_p0 = scmp.ge.s32.totalorder %s965_s18, 1  ;;  %s965_s18 = sphi %s1005_s18, %s15_s18  }
   0x2   : > { %p236_p1 = scmp.lt.s32.totalorder %s965_s18, 3 }
   0x4   : > { %p237_p2 = pnand %p864_p0, %p236_p1 }
   0x5   : > { %s865_s20 = sshll.u32 (!%p237_p2), %s860_s19, 2 }
   0x6   : > { %240 = sbr.rel (%p237_p2) target bundleno = 234 (0xea), region = 40  ;;  %p290_p3 = scmp.lt.s32.totalorder (!%p237_p2), %s865_s20, 7 }
   0xb   : > { %v967_v0 = vmov 1   ;;  %v968_v1 = vmov 0   ;;  %s1423_s20 = smov (!%p290_p3, %s865_s20), 7  ;;  %v969_v6 = vmov 2   ;;  %v970_v7 = vmov 5  }
   0xc   : > { %907 = vset.pattern.permute.xlu2 %v967_v0  ;;  %906 = vset.pattern.permute.xlu1 %v968_v1  ;;  %s866_s21 = sshll.u32 %s1423_s20, 3  ;;  %v971_v8 = vmov 6   ;;  %v972_v9 = vmov 7   ;;  %v973_v10 = vmov 3   ;;  %v974_v11 = vmov 4   ;;  %s1020_s25 = sshll.u32 %s1423_s20, 4 }
   0xd   : > { %905 = vset.pattern.permute.xlu0 %v968_v1  ;;  %s293_s24 = scalar_lea.vmem %s1390_s0, %s866_s21  ;;  %s1026_s28 = scalar_lea.vmem %s1392_s2, %s1020_s25 }
   0xe   : > { %v332_v2 = vld [vmem:[%s293_s24 + $0x10] sm:$0xff]  ;;  %v330_v3 = vld [vmem:[%s293_s24] sm:$0xff]  ;;  %v333_v4 = vld [vmem:[%s293_s24 + $0x18] sm:$0xff]  ;;  %s1032_s6 = scalar_lea.vmem %s1391_s1, %s1020_s25  ;;  %s1090_s9 = scalar_lea.vmem %s1394_s4, %s1020_s25 }
   0xf   : > { %354 = vperm.xlu1 %906, %v332_v2   ;;  %379 = vperm.xlu2 %907, %v330_v3   ;;  %v331_v5 = vld [vmem:[%s293_s24 + $0x8] sm:$0xff]  ;;  %v370_v17 = vld [vmem:[%s1026_s28] sm:$0xff]  ;;  %v336_v38 = vld [vmem:[%s1032_s6 + $0x10] sm:$0xff]  ;;  %s1252_s12 = scalar_lea.vmem %s1393_s3, %s1020_s25  ;;  %s1366_s15 = scalar_lea.vmem %s1395_s5, %s1020_s25 }
  0x10   : > { %344 = vperm.xlu0 %905, %v330_v3   ;;  %v334_v18 = vld [vmem:[%s1032_s6] sm:$0xff]  ;;  %v371_v19 = vld [vmem:[%s1026_s28 + $0x8] sm:$0xff]  ;;  %v372_v42 = vld [vmem:[%s1026_s28 + $0x10] sm:$0xff] }
  0x11   : > { %v335_v20 = vld [vmem:[%s1032_s6 + $0x8] sm:$0xff]  ;;  %v374_v36 = vld [vmem:[%s1026_s28 + $0x20] sm:$0xff]  ;;  %v337_v44 = vld [vmem:[%s1032_s6 + $0x18] sm:$0xff] }
  0x12   : > { %v338_v39 = vld [vmem:[%s1032_s6 + $0x20] sm:$0xff]  ;;  %v375_v41 = vld [vmem:[%s1026_s28 + $0x28] sm:$0xff]  ;;  %v373_v49 = vld [vmem:[%s1026_s28 + $0x18] sm:$0xff] }
  0x13   : > { %v339_v46 = vld [vmem:[%s1032_s6 + $0x28] sm:$0xff]  ;;  %v376_v51 = vld [vmem:[%s1026_s28 + $0x30] sm:$0xff]  ;;  %v377_v55 = vld [vmem:[%s1026_s28 + $0x38] sm:$0xff] }
  0x14   : > { %v340_v57 = vld [vmem:[%s1032_s6 + $0x30] sm:$0xff]  ;;  %v341_v60 = vld [vmem:[%s1032_s6 + $0x38] sm:$0xff] }
  0x17   : > { %359 = vperm.xlu1 %906, %v333_v4   ;;  %383 = vperm.xlu2 %907, %v331_v5  }
  0x18   : > { %349 = vperm.xlu0 %905, %v331_v5  }
  0x1f   : > { %909 = vset.pattern.permute.xlu1 %v967_v0  ;;  %910 = vset.pattern.permute.xlu2 %v969_v6 }
  0x20   : > { %908 = vset.pattern.permute.xlu0 %v967_v0  ;;  %391 = vperm.xlu1 %909, %v333_v4  }
  0x21   : > { %411 = vperm.xlu2 %910, %v330_v3   ;;  %387 = vperm.xlu0 %908, %v332_v2  }
  0x28   : > { %911 = vset.pattern.permute.xlu1 %v969_v6 }
  0x29   : > { %419 = vperm.xlu2 %910, %v332_v2   ;;  %912 = vset.pattern.permute.xlu0 %v969_v6 }
  0x2a   : > { %415 = vperm.xlu1 %911, %v331_v5   ;;  %423 = vperm.xlu0 %912, %v333_v4  }
  0x31   : > { %914 = vset.pattern.permute.xlu2 %v970_v7 }
  0x32   : > { %913 = vset.pattern.permute.xlu1 %v970_v7  ;;  %599 = vperm.xlu2 %914, %v331_v5  }
  0x33   : > { %595 = vperm.xlu1 %913, %v330_v3   ;;  %915 = vset.pattern.permute.xlu0 %v971_v8 }
  0x34   : > { %619 = vperm.xlu0 %915, %v330_v3  }
  0x3a   : > { %607 = vperm.xlu2 %914, %v333_v4  }
  0x3b   : > { %603 = vperm.xlu1 %913, %v332_v2  }
  0x3c   : > { %919 = vset.pattern.permute.xlu0 %v972_v9 }
  0x3d   : > { %655 = vperm.xlu0 %919, %v331_v5  }
  0x42   : > { %917 = vset.pattern.permute.xlu2 %v971_v8 }
  0x43   : > { %916 = vset.pattern.permute.xlu1 %v971_v8  ;;  %627 = vperm.xlu2 %917, %v332_v2  }
  0x44   : > { %623 = vperm.xlu1 %916, %v331_v5  }
  0x45   : > { %923 = vset.pattern.permute.xlu0 %v973_v10 }
  0x46   : > { %691 = vperm.xlu0 %923, %v332_v2  }
  0x4b   : > { %918 = vset.pattern.permute.xlu2 %v972_v9 }
  0x4c   : > { %631 = vperm.xlu1 %916, %v333_v4   ;;  %651 = vperm.xlu2 %918, %v330_v3  }
  0x4e   : > { %926 = vset.pattern.permute.xlu0 %v974_v11 }
  0x4f   : > { %719 = vperm.xlu0 %926, %v333_v4  }
  0x54   : > { %920 = vset.pattern.permute.xlu1 %v972_v9  ;;  %663 = vperm.xlu2 %918, %v333_v4  }
  0x55   : > { %659 = vperm.xlu1 %920, %v332_v2  }
  0x5c   : > { %922 = vset.pattern.permute.xlu2 %v973_v10 }
  0x5d   : > { %921 = vset.pattern.permute.xlu1 %v973_v10  ;;  %687 = vperm.xlu2 %922, %v331_v5  }
  0x5e   : > { %683 = vperm.xlu1 %921, %v330_v3  }
  0x65   : > { %695 = vperm.xlu2 %922, %v333_v4  }
  0x66   : > { %924 = vset.pattern.permute.xlu1 %v974_v11 }
  0x67   : > { %707 = vperm.xlu1 %924, %v330_v3  }
  0x69   : > { %v380_v12 = vpop.permute.xlu2 %379 }
  0x6a   : > { %v394_v22 = vmul.f32 %v380_v12, %v370_v17  ;;  %v395_v24 = vmul.f32 %v380_v12, %v371_v19 }
  0x6d   : > { %925 = vset.pattern.permute.xlu2 %v974_v11 }
  0x6e   : > { %715 = vperm.xlu2 %925, %v332_v2  }
  0x6f   : > { %711 = vperm.xlu1 %924, %v331_v5  }
  0x71   : > { %v384_v13 = vpop.permute.xlu2 %383 }
  0x72   : > { %v396_v53 = vmul.f32 %v384_v13, %v372_v42  ;;  %v397_v59 = vmul.f32 %v384_v13, %v373_v49 }
  0x7b   : > { %v412_v15 = vpop.permute.xlu2 %411 }
  0x81   : > { %v355_v14 = vpop.permute.xlu1 %354 }
  0x82   : > { %v345_v16 = vpop.permute.xlu0 %344  ;;  %v366_v50 = vmul.f32 %v355_v14, %v338_v39  ;;  %v367_v56 = vmul.f32 %v355_v14, %v339_v46 }
  0x83   : > { %v362_v23 = vmul.f32 %v345_v16, %v334_v18  ;;  %v363_v25 = vmul.f32 %v345_v16, %v335_v20  ;;  %v420_v26 = vpop.permute.xlu2 %419 }
  0x85   : > { %v402_v27 = vadd.f32 %v394_v22, %v362_v23  ;;  %v403_v29 = vadd.f32 %v395_v24, %v363_v25 }
  0x87   : > { %v426_v30 = vadd.f32 %v412_v15, %v402_v27  ;;  %v427_v32 = vadd.f32 %v412_v15, %v403_v29 }
  0x89   : > { %v360_v21 = vpop.permute.xlu1 %359  ;;  %v434_v33 = vsub.f32 0.0, %v426_v30  ;;  %v435_v34 = vsub.f32 0.0, %v427_v32 }
  0x8a   : > { %v350_v28 = vpop.permute.xlu0 %349  ;;  %v368_v2 = vmul.f32 %v360_v21, %v340_v57  ;;  %v369_v5 = vmul.f32 %v360_v21, %v341_v60 }
  0x8b   : > { %v442_v40 = vmul.f32 1.442695, %v434_v33  ;;  %v444_v43 = vmul.f32 1.442695, %v435_v34  ;;  %v364_v47 = vmul.f32 %v350_v28, %v336_v38  ;;  %v365_v54 = vmul.f32 %v350_v28, %v337_v44 }
  0x8c   : > { %v1038_v35 = vpop.permute.xlu2 %599 }
  0x8d   : > { %927 = vpow2.f32 %v442_v40  ;;  %v404_v62 = vadd.f32 %v396_v53, %v364_v47  ;;  %v405_v3 = vadd.f32 %v397_v59, %v365_v54 }
  0x8e   : > { %929 = vpow2.f32 %v444_v43 }
  0x92   : > { %v392_v31 = vpop.permute.xlu1 %391 }
  0x93   : > { %v388_v37 = vpop.permute.xlu0 %387  ;;  %v400_v61 = vmul.f32 %v392_v31, %v376_v51  ;;  %v401_v63 = vmul.f32 %v392_v31, %v377_v55  ;;  %v928_v8 = vpop.eup %927 }
  0x94   : > { %v398_v45 = vmul.f32 %v388_v37, %v374_v36  ;;  %v399_v52 = vmul.f32 %v388_v37, %v375_v41  ;;  %v1052_v1 = vpop.permute.xlu2 %607  ;;  %v930_v11 = vpop.eup %929  ;;  %v1056_v17 = vadd.f32 1.0, %v928_v8 }
  0x95   : > { %v408_v10 = vadd.f32 %v400_v61, %v368_v2  ;;  %v409_v14 = vadd.f32 %v401_v63, %v369_v5  ;;  %v1058_v20 = vadd.f32 1.0, %v930_v11  ;;  %v588_v63 = vld [vmem:[%s1090_s9 + $0x10] sm:$0xff] }
  0x96   : > { %v406_v58 = vadd.f32 %v398_v45, %v366_v50  ;;  %v407_v0 = vadd.f32 %v399_v52, %v367_v56  ;;  %931 = vrcp.f32 %v1056_v17  ;;  %v586_v56 = vld [vmem:[%s1090_s9] sm:$0xff]  ;;  %v475_v61 = vand.u32 2147483647, %v1056_v17 }
  0x97   : > { %933 = vrcp.f32 %v1058_v20  ;;  %vm471_vm2 = vweird.f32 %v1056_v17  ;;  %v492_v8 = vand.u32 2147483648, %v1058_v20  ;;  %vm486_vm4 = vweird.f32 %v1058_v20 }
  0x98   : > { %v430_v6 = vadd.f32 %v420_v26, %v406_v58  ;;  %v431_v12 = vadd.f32 %v420_v26, %v407_v0  ;;  %v587_v58 = vld [vmem:[%s1090_s9 + $0x8] sm:$0xff]  ;;  %v589_v0 = vld [vmem:[%s1090_s9 + $0x18] sm:$0xff]  ;;  %v490_v11 = vand.u32 2147483647, %v1058_v20  ;;  %vm476_vm6 = vcmp.eq.f32.partialorder %v475_v61, 8.507059e+37 }
  0x9a   : > { %v438_v18 = vsub.f32 0.0, %v430_v6  ;;  %v439_v21 = vsub.f32 0.0, %v431_v12  ;;  %vm491_vm7 = vcmp.eq.f32.partialorder %v490_v11, 8.507059e+37 }
  0x9c   : > { %v416_v48 = vpop.permute.xlu1 %415  ;;  %v424_v7 = vpop.permute.xlu0 %423  ;;  %v450_v25 = vmul.f32 1.442695, %v438_v18  ;;  %v452_v29 = vmul.f32 1.442695, %v439_v21 }
  0x9d   : > { %v428_v4 = vadd.f32 %v416_v48, %v404_v62  ;;  %v429_v9 = vadd.f32 %v416_v48, %v405_v3  ;;  %v432_v16 = vadd.f32 %v424_v7, %v408_v10  ;;  %v433_v19 = vadd.f32 %v424_v7, %v409_v14  ;;  %v1061_v26 = vpop.permute.xlu2 %627  ;;  %v1066_v33 = vpop.eup %931 }
  0x9e   : > { %v1068_v34 = vpop.eup %933  ;;  %v467_v37 = vmul.f32 %v1066_v33, %v1056_v17  ;;  %vm472_vm0 = vweird.f32 %v1066_v33  ;;  %v477_v3 = vand.u32 2147483648, %v1056_v17  ;;  %v1139_v14 = vmul.f32 %v1038_v35, %v588_v63 }
  0x9f   : > { %v436_v15 = vsub.f32 0.0, %v428_v4  ;;  %v437_v22 = vsub.f32 0.0, %v429_v9  ;;  %v440_v24 = vsub.f32 0.0, %v432_v16  ;;  %v441_v27 = vsub.f32 0.0, %v433_v19  ;;  %vm1130_vm3 = vmor %vm471_vm2, %vm472_vm0  ;;  %v593_v16 = vld [vmem:[%s1090_s9 + $0x38] sm:$0xff] }
  0xa0   : > { %v482_v40 = vmul.f32 %v1068_v34, %v1058_v20  ;;  %v468_v47 = vsub.f32 1.0, %v467_v37  ;;  %vm487_vm1 = vweird.f32 %v1068_v34  ;;  %v591_v37 = vld [vmem:[%s1090_s9 + $0x28] sm:$0xff] }
  0xa1   : > { %v446_v23 = vmul.f32 1.442695, %v436_v15  ;;  %v448_v28 = vmul.f32 1.442695, %v437_v22  ;;  %v454_v31 = vmul.f32 1.442695, %v440_v24  ;;  %vm1151_vm5 = vmor %vm486_vm4, %vm487_vm1 }
  0xa2   : > { %v456_v32 = vmul.f32 1.442695, %v441_v27  ;;  %v483_v50 = vsub.f32 1.0, %v482_v40  ;;  %v469_v54 = vmul.f32 %v1066_v33, %v468_v47  ;;  %v592_v15 = vld [vmem:[%s1090_s9 + $0x30] sm:$0xff]  ;;  %v478_v22 = vor.u32 1.1754944e-38, %v477_v3 }
  0xa3   : > { %935 = vpow2.f32 %v446_v23 }
  0xa4   : > { %937 = vpow2.f32 %v450_v25  ;;  %v484_v55 = vmul.f32 %v1068_v34, %v483_v50  ;;  %v470_v60 = vadd.f32 %v1066_v33, %v469_v54  ;;  %v493_v25 = vor.u32 1.1754944e-38, %v492_v8 }
  0xa5   : > { %v1054_v13 = vpop.permute.xlu1 %595  ;;  %939 = vpow2.f32 %v448_v28 }
  0xa6   : > { %941 = vpow2.f32 %v452_v29  ;;  %v1072_v39 = vpop.permute.xlu2 %651  ;;  %v610_v2 = vmul.f32 %v1054_v13, %v586_v56  ;;  %v485_v4 = vadd.f32 %v1068_v34, %v484_v55  ;;  %v611_v6 = vmul.f32 %v1054_v13, %v587_v58  ;;  %v620_v7 = vpop.permute.xlu0 %619 }
  0xa7   : > { %943 = vpow2.f32 %v454_v31  ;;  %v1142_v13 = vmul.f32 %v1038_v35, %v589_v0  ;;  %v474_v17 = vsel %vm1130_vm3, %v1066_v33, %v470_v60  ;;  %v1168_v29 = vmul.f32 %v1052_v1, %v592_v15 }
  0xa8   : > { %945 = vpow2.f32 %v456_v32  ;;  %v634_v35 = vadd.f32 %v620_v7, %v610_v2  ;;  %v489_v21 = vsel %vm1151_vm5, %v1068_v34, %v485_v4  ;;  %v635_v24 = vadd.f32 %v620_v7, %v611_v6 }
  0xa9   : > { %v936_v36 = vpop.eup %935  ;;  %v1171_v31 = vmul.f32 %v1052_v1, %v593_v16  ;;  %v479_v32 = vsel %vm476_vm6, %v478_v22, %v474_v17  ;;  %v494_v34 = vsel %vm491_vm7, %v493_v25, %v489_v21  ;;  %v680_v22 = vld [vmem:[%s1252_s12 + $0x30] sm:$0xff] }
  0xaa   : > { %v938_v38 = vpop.eup %937  ;;  %v1078_v44 = vadd.f32 1.0, %v936_v36  ;;  %v590_v36 = vld [vmem:[%s1090_s9 + $0x20] sm:$0xff]  ;;  %v643_v50 = vmul.f32 %v635_v24, %v494_v34 }
  0xab   : > { %v940_v41 = vpop.eup %939  ;;  %v1080_v46 = vadd.f32 1.0, %v938_v38 }
  0xac   : > { %v942_v43 = vpop.eup %941  ;;  %v1082_v49 = vadd.f32 1.0, %v940_v41  ;;  %947 = vrcp.f32 %v1078_v44  ;;  %v505_v63 = vand.u32 2147483647, %v1078_v44  ;;  %v507_v0 = vand.u32 2147483648, %v1078_v44 }
  0xad   : > { %v1064_v30 = vpop.permute.xlu1 %603  ;;  %v944_v45 = vpop.eup %943  ;;  %v1084_v51 = vadd.f32 1.0, %v942_v43  ;;  %949 = vrcp.f32 %v1080_v46  ;;  %v537_v28 = vand.u32 2147483648, %v1080_v46  ;;  %v535_v41 = vand.u32 2147483647, %v1080_v46 }
  0xae   : > { %v946_v48 = vpop.eup %945  ;;  %v1093_v52 = vadd.f32 1.0, %v944_v45  ;;  %951 = vrcp.f32 %v1082_v49  ;;  %v1107_v59 = vpop.permute.xlu2 %663  ;;  %v642_v43 = vmul.f32 %v634_v35, %v479_v32  ;;  %v614_v60 = vmul.f32 %v1064_v30, %v590_v36 }
  0xaf   : > { %v1096_v53 = vadd.f32 1.0, %v946_v48  ;;  %953 = vrcp.f32 %v1084_v51  ;;  %v1188_v54 = vpop.permute.xlu0 %655  ;;  %v1190_v56 = vor.u32 1.1754944e-38, %v537_v28  ;;  %v550_v58 = vand.u32 2147483647, %v1084_v51 }
  0xb0   : > { %955 = vrcp.f32 %v1093_v52  ;;  %v615_v61 = vmul.f32 %v1064_v30, %v591_v37  ;;  %v520_v3 = vand.u32 2147483647, %v1082_v49  ;;  %v552_v6 = vand.u32 2147483648, %v1084_v51 }
  0xb1   : > { %957 = vrcp.f32 %v1096_v53  ;;  %v1201_v7 = vadd.f32 %v1072_v39, %v642_v43  ;;  %v1204_v15 = vadd.f32 %v1072_v39, %v643_v50  ;;  %vm501_vm8 = vweird.f32 %v1078_v44 }
  0xb2   : > { %v1113_v62 = vpop.eup %947  ;;  %vm516_vm9 = vweird.f32 %v1082_v49  ;;  %vm531_vm10 = vweird.f32 %v1080_v46  ;;  %v1211_v16 = vadd.f32 %v1061_v26, %v614_v60  ;;  %v1214_v17 = vadd.f32 %v1061_v26, %v615_v61  ;;  %v675_v60 = vld [vmem:[%s1252_s12 + $0x8] sm:$0xff] }
  0xb3   : > { %v1121_v5 = vpop.eup %949  ;;  %v497_v19 = vmul.f32 %v1113_v62, %v1078_v44  ;;  %vm1216_vm11 = vcmp.eq.f32.partialorder %v505_v63, 8.507059e+37  ;;  %v508_v39 = vor.u32 1.1754944e-38, %v507_v0  ;;  %vm546_vm12 = vweird.f32 %v1084_v51 }
  0xb4   : > { %v1126_v9 = vpop.eup %951  ;;  %v527_v40 = vmul.f32 %v1121_v5, %v1080_v46  ;;  %vm502_vm13 = vweird.f32 %v1113_v62  ;;  %vm1224_vm14 = vcmp.eq.f32.partialorder %v520_v3, 8.507059e+37  ;;  %v565_v26 = vand.u32 2147483647, %v1093_v52 }
  0xb5   : > { %v1136_v12 = vpop.eup %953  ;;  %v512_v27 = vmul.f32 %v1126_v9, %v1082_v49  ;;  %v498_v38 = vsub.f32 1.0, %v497_v19  ;;  %v522_v19 = vand.u32 2147483648, %v1082_v49  ;;  %vm517_vm15 = vweird.f32 %v1126_v9  ;;  %vm1244_vm2 = vmor %vm501_vm8, %vm502_vm13 }
  0xb6   : > { %v1076_v42 = vpop.permute.xlu1 %623  ;;  %v1157_v20 = vpop.eup %955  ;;  %v542_v48 = vmul.f32 %v1136_v12, %v1084_v51  ;;  %v528_v4 = vsub.f32 1.0, %v527_v40  ;;  %v567_v34 = vand.u32 2147483648, %v1093_v52  ;;  %v580_v36 = vand.u32 2147483647, %v1096_v53  ;;  %vm1266_vm5 = vmor %vm516_vm9, %vm517_vm15 }
  0xb7   : > { %v1162_v23 = vpop.eup %957  ;;  %v1180_v45 = vpop.permute.xlu2 %687  ;;  %v557_v1 = vmul.f32 %v1157_v20, %v1093_v52  ;;  %v513_v55 = vsub.f32 1.0, %v512_v27  ;;  %v499_v2 = vmul.f32 %v1113_v62, %v498_v38  ;;  %vm562_vm0 = vweird.f32 %v1157_v20  ;;  %v676_v38 = vld [vmem:[%s1252_s12 + $0x10] sm:$0xff] }
  0xb8   : > { %v572_v47 = vmul.f32 %v1162_v23, %v1096_v53  ;;  %v543_v11 = vsub.f32 1.0, %v542_v48  ;;  %v529_v21 = vmul.f32 %v1121_v5, %v528_v4  ;;  %vm1238_vm1 = vcmp.eq.f32.partialorder %v535_v41, 8.507059e+37 }
  0xb9   : > { %v558_v8 = vsub.f32 1.0, %v557_v1  ;;  %v514_v30 = vmul.f32 %v1126_v9, %v513_v55  ;;  %v500_v35 = vadd.f32 %v1113_v62, %v499_v2  ;;  %v523_v40 = vor.u32 1.1754944e-38, %v522_v19  ;;  %v679_v19 = vld [vmem:[%s1252_s12 + $0x28] sm:$0xff] }
  0xba   : > { %v573_v10 = vsub.f32 1.0, %v572_v47  ;;  %v544_v28 = vmul.f32 %v1136_v12, %v543_v11  ;;  %vm561_vm3 = vweird.f32 %v1093_v52  ;;  %vm577_vm4 = vweird.f32 %v1162_v23  ;;  %v678_v52 = vld [vmem:[%s1252_s12 + $0x20] sm:$0xff]  ;;  %v692_v47 = vpop.permute.xlu0 %691 }
  0xbb   : > { %v559_v25 = vmul.f32 %v1157_v20, %v558_v8  ;;  %v515_v32 = vadd.f32 %v1126_v9, %v514_v30  ;;  %v582_v41 = vand.u32 2147483648, %v1096_v53  ;;  %v504_v43 = vsel %vm1244_vm2, %v1113_v62, %v500_v35  ;;  %vm1277_vm8 = vmor %vm561_vm3, %vm562_vm0 }
  0xbc   : > { %v574_v27 = vmul.f32 %v1162_v23, %v573_v10  ;;  %vm576_vm6 = vweird.f32 %v1096_v53  ;;  %v530_v48 = vadd.f32 %v1121_v5, %v529_v21  ;;  %vm532_vm7 = vweird.f32 %v1121_v5  ;;  %v674_v53 = vld [vmem:[%s1252_s12] sm:$0xff] }
  0xbd   : > { %v560_v50 = vadd.f32 %v1157_v20, %v559_v25  ;;  %v545_v55 = vadd.f32 %v1136_v12, %v544_v28  ;;  %vm547_vm9 = vweird.f32 %v1136_v12  ;;  %v519_v61 = vsel %vm1266_vm5, %v1126_v9, %v515_v32  ;;  %vm1295_vm15 = vmor %vm576_vm6, %vm577_vm4  ;;  %v681_v28 = vld [vmem:[%s1252_s12 + $0x38] sm:$0xff] }
  0xbe   : > { %v1103_v57 = vpop.permute.xlu1 %631  ;;  %v575_v49 = vadd.f32 %v1162_v23, %v574_v27  ;;  %vm1289_vm13 = vcmp.eq.f32.partialorder %v565_v26, 8.507059e+37  ;;  %v568_v0 = vor.u32 1.1754944e-38, %v567_v34  ;;  %vm1299_vm0 = vcmp.eq.f32.partialorder %v580_v36, 8.507059e+37  ;;  %vm1311_vm2 = vmor %vm531_vm10, %vm532_vm7 }
  0xbf   : > { %v1257_v44 = vpop.permute.xlu2 %695  ;;  %v636_v4 = vadd.f32 %v1076_v42, %v1139_v14  ;;  %v637_v9 = vadd.f32 %v1076_v42, %v1142_v13  ;;  %v702_v8 = vmul.f32 %v692_v47, %v678_v52  ;;  %v583_v10 = vor.u32 1.1754944e-38, %v582_v41  ;;  %vm1325_vm3 = vmor %vm546_vm12, %vm547_vm9 }
  0xc0   : > { %v509_v30 = vsel %vm1216_vm11, %v508_v39, %v504_v43  ;;  %v534_v14 = vsel %vm1311_vm2, %v1121_v5, %v530_v48  ;;  %v524_v18 = vsel %vm1224_vm14, %v523_v40, %v519_v61  ;;  %v564_v39 = vsel %vm1277_vm8, %v1157_v20, %v560_v50  ;;  %v677_v40 = vld [vmem:[%s1252_s12 + $0x18] sm:$0xff] }
  0xc1   : > { %v579_v5 = vsel %vm1295_vm15, %v1162_v23, %v575_v49  ;;  %v549_v35 = vsel %vm1325_vm3, %v1136_v12, %v545_v55  ;;  %v640_v21 = vadd.f32 %v1103_v57, %v1168_v29  ;;  %v703_v27 = vmul.f32 %v692_v47, %v679_v19 }
  0xc2   : > { %v641_v23 = vadd.f32 %v1103_v57, %v1171_v31  ;;  %v539_v12 = vsel %vm1238_vm1, %v1190_v56, %v534_v14  ;;  %vm551_vm10 = vcmp.eq.f32.partialorder %v550_v58, 8.507059e+37  ;;  %v644_v29 = vmul.f32 %v636_v4, %v509_v30 }
  0xc3   : > { %v645_v36 = vmul.f32 %v637_v9, %v524_v18  ;;  %v569_v57 = vsel %vm1289_vm13, %v568_v0, %v564_v39  ;;  %v584_v31 = vsel %vm1299_vm0, %v583_v10, %v579_v5  ;;  %v704_v56 = vmul.f32 %v1257_v44, %v680_v22 }
  0xc4   : > { %v648_v58 = vmul.f32 %v640_v21, %v569_v57  ;;  %v649_v43 = vmul.f32 %v641_v23, %v584_v31  ;;  %v705_v1 = vmul.f32 %v1257_v44, %v681_v28  ;;  %v700_v47 = vmul.f32 %v1180_v45, %v676_v38 }
  0xc5   : > { %v701_v48 = vmul.f32 %v1180_v45, %v677_v40 }
  0xc6   : > { %v672_v44 = vadd.f32 %v1107_v59, %v648_v58  ;;  %v673_v63 = vadd.f32 %v1107_v59, %v649_v43 }
  0xc7   : > { %v1173_v33 = vpop.permute.xlu1 %659 }
  0xc8   : > { %v716_v51 = vpop.permute.xlu2 %715 }
  0xc9   : > { %v726_v62 = vadd.f32 %v716_v51, %v702_v8 }
  0xd0   : > { %v684_v24 = vpop.permute.xlu1 %683 }
  0xd1   : > { %v698_v46 = vmul.f32 %v684_v24, %v674_v53  ;;  %v699_v13 = vmul.f32 %v684_v24, %v675_v60  ;;  %v553_v24 = vor.u32 1.1754944e-38, %v552_v6  ;;  %v727_v53 = vadd.f32 %v716_v51, %v703_v27 }
  0xd2   : > { %v668_v60 = vadd.f32 %v1188_v54, %v644_v29 }
  0xd3   : > { %v554_v32 = vsel %vm551_vm10, %v553_v24, %v549_v35 }
  0xd4   : > { %v647_v52 = vmul.f32 %v1214_v17, %v554_v32  ;;  %v669_v17 = vadd.f32 %v1188_v54, %v645_v36 }
  0xd6   : > { %v671_v55 = vadd.f32 %v1173_v33, %v647_v52 }
  0xd8   : > { %v735_v4 = vadd.f32 %v727_v53, %v671_v55 }
  0xd9   : > { %v708_v26 = vpop.permute.xlu1 %707 }
  0xda   : > { %v722_v25 = vadd.f32 %v708_v26, %v698_v46  ;;  %v723_v20 = vadd.f32 %v708_v26, %v699_v13  ;;  %v743_v54 = vmax.f32 %v735_v4, 0.0 }
  0xdc   : > { %v730_v34 = vadd.f32 %v722_v25, %v1201_v7  ;;  %v731_v6 = vadd.f32 %v723_v20, %v1204_v15  ;;  %v720_v7 = vpop.permute.xlu0 %719  ;;  %v646_v15 = vmul.f32 %v1211_v16, %v539_v12  ;;  %751 = vst [vmem:[%s1366_s15 + $0x28] sm:$0xff] %v743_v54 }
  0xdd   : > { %v728_v49 = vadd.f32 %v720_v7, %v704_v56  ;;  %v729_v0 = vadd.f32 %v720_v7, %v705_v1 }
  0xde   : > { %v738_v37 = vmax.f32 %v730_v34, 0.0  ;;  %v739_v41 = vmax.f32 %v731_v6, 0.0  ;;  %v670_v50 = vadd.f32 %v1173_v33, %v646_v15 }
  0xdf   : > { %v736_v9 = vadd.f32 %v728_v49, %v672_v44  ;;  %v737_v11 = vadd.f32 %v729_v0, %v673_v63 }
  0xe0   : > { %746 = vst [vmem:[%s1366_s15] sm:$0xff] %v738_v37  ;;  %v734_v2 = vadd.f32 %v726_v62, %v670_v50 }
  0xe1   : > { %747 = vst [vmem:[%s1366_s15 + $0x8] sm:$0xff] %v739_v41  ;;  %v712_v16 = vpop.permute.xlu1 %711  ;;  %v744_v19 = vmax.f32 %v736_v9, 0.0  ;;  %v745_v14 = vmax.f32 %v737_v11, 0.0 }
  0xe2   : > { %v724_v61 = vadd.f32 %v712_v16, %v700_v47  ;;  %v725_v45 = vadd.f32 %v712_v16, %v701_v48  ;;  %v742_v30 = vmax.f32 %v734_v2, 0.0 }
  0xe3   : > { %752 = vst [vmem:[%s1366_s15 + $0x30] sm:$0xff] %v744_v19 }
  0xe4   : > { %v732_v33 = vadd.f32 %v724_v61, %v668_v60  ;;  %v733_v3 = vadd.f32 %v725_v45, %v669_v17  ;;  %750 = vst [vmem:[%s1366_s15 + $0x20] sm:$0xff] %v742_v30 }
  0xe5   : > { %753 = vst [vmem:[%s1366_s15 + $0x38] sm:$0xff] %v745_v14 }
  0xe6   : > { %v740_v8 = vmax.f32 %v732_v33, 0.0  ;;  %v741_v10 = vmax.f32 %v733_v3, 0.0 }
  0xe8   : > { %748 = vst [vmem:[%s1366_s15 + $0x10] sm:$0xff] %v740_v8 }
  0xe9   : > { %749 = vst [vmem:[%s1366_s15 + $0x18] sm:$0xff] %v741_v10 }
  0xea PF: > { %s15_s18 = sadd.s32 1, %s965_s18  }
  0xeb   : > { %p12_p4 = scmp.ge.s32.totalorder %s15_s18, 4  }
  0xed   :  { %14 = sbr.rel (!%p12_p4) target bundleno = 1 (0x1), region = 82 }

</bundles_post_ra>
